<compile_context>
chip_gen: v6e
topology: v6e:2x2x1
jax: 0.10.0
libtpu: 0.0.40
codegen_flags: <defaults>
</compile_context>

<pallas_src>
import math

import jax
import jax.numpy as jnp
from jax.experimental import pallas as pl
from jax.experimental.pallas import tpu as pltpu

EMBEDDING_DIM = 128
VOCAB_SIZE = 500          # == max_len in the original script
PE_MAX_LEN = 5000         # PositionalEncoding default max_len


def _round_up(x, m):
    return (x + m - 1) // m * m


# --------------------------- one-time parameter prep ---------------------------

def make_positional_encoding(max_len, d_model):
    """Matches the PyTorch PositionalEncoding buffer construction."""
    position = jnp.arange(max_len, dtype=jnp.float32)[:, None]
    div_term = jnp.exp(jnp.arange(0, d_model, 2, dtype=jnp.float32)
                       * (-math.log(10000.0) / d_model))
    pe = jnp.zeros((max_len, d_model), jnp.float32)
    pe = pe.at[:, 0::2].set(jnp.sin(position * div_term))
    pe = pe.at[:, 1::2].set(jnp.cos(position * div_term))
    return pe


def prepare_params(emb_table, pe_max_len=PE_MAX_LEN):
    """One-time prep (hoisted out of the per-call path):
       - sublane-pad the vocab table rows to a multiple of 8,
       - build the full sinusoidal PE table (rows padded to a multiple of 128 so
         any seq-block window stays in bounds; first `pe_max_len` rows match torch)."""
    v, e = emb_table.shape
    v_pad = _round_up(v, 8)
    emb_padded = jnp.zeros((v_pad, e), jnp.float32).at[:v].set(
        emb_table.astype(jnp.float32))
    pe = make_positional_encoding(_round_up(pe_max_len, 128), e)
    return {"emb": emb_padded, "pe": pe}


# ----------------------------------- kernel ------------------------------------

def encoder_kernel(ids_ref, emb_ref, pe_ref, out_ref):
    """One (batch, seq-block) tile: gather TS embedding rows, add PE, store."""
    bi = pl.program_id(0)
    si = pl.program_id(1)
    ts = pe_ref.shape[0]                       # static seq-block size
    s_pad = pl.num_programs(1) * ts            # padded sequence length
    base = bi * s_pad + si * ts                # flat offset into SMEM ids

    # Direct row gather from the VMEM-resident table: one dynamic sublane slice
    # per token, unrolled over the (small, static) seq block.  Exact in f32.
    rows = [emb_ref[pl.ds(ids_ref[base + j], 1), :] for j in range(ts)]
    gathered = jnp.concatenate(rows, axis=0)                       # (TS, E)

    # Add the PE window for this seq block; single lane-dense (TS, E) store.
    out_ref[0] = gathered + pe_ref[...]


# ----------------------------------- wrapper ------------------------------------

def _choose_seq_block(s):
    if s <= 128:
        return _round_up(s, 8)
    return 128


def transformer_encoder_forward(x_ids, params):
    """x_ids: (B, S) int token ids -> (B, S, E) float32."""
    b, s = x_ids.shape
    emb = params["emb"]                        # (V_pad, E) f32, VMEM resident
    pe = params["pe"]                          # (PE_pad, E) f32, windowed per block
    e = emb.shape[1]

    ts = _choose_seq_block(s)
    s_pad = _round_up(s, ts)

    ids = x_ids.astype(jnp.int32)
    if s_pad != s:
        ids = jnp.pad(ids, ((0, 0), (0, s_pad - s)))   # pad with id 0 (valid row)
    ids_flat = ids.reshape(b * s_pad)                  # 1-D -> cheap SMEM layout

    grid = (b, s_pad // ts)

    # Explicit VMEM budget: whole table + double-buffered PE/out blocks + slack.
    approx_bytes = emb.size * 4 + 4 * ts * e * 4
    vmem_limit = int(min(64 << 20, max(8 << 20, 4 * approx_bytes)))

    out = pl.pallas_call(
        encoder_kernel,
        out_shape=jax.ShapeDtypeStruct((b, s_pad, e), jnp.float32),
        grid_spec=pltpu.PrefetchScalarGridSpec(
            num_scalar_prefetch=1,             # ids -> SMEM, visible to index_maps
            grid=grid,
            in_specs=[
                # Whole embedding table resident in VMEM (small vocab here).
                # TODO(synk): for a realistic 32k-50k vocab, switch to an
                # HBM-resident table (memory_space=pl.ANY) with per-row DMA.
                pl.BlockSpec(memory_space=pltpu.MemorySpace.VMEM),
                # PE windowed per seq block (no per-call wrapper slice).
                pl.BlockSpec((ts, e), lambda bi, si, ids_ref: (si, 0)),
            ],
            out_specs=pl.BlockSpec((1, ts, e),
                                   lambda bi, si, ids_ref: (bi, si, 0)),
        ),
        compiler_params=pltpu.CompilerParams(
            dimension_semantics=("parallel", "parallel"),
            vmem_limit_bytes=vmem_limit,
        ),
    )(ids_flat, emb, pe)

    if s_pad != s:
        out = out[:, :s, :]
    return out


# ---------------------------------- reference -----------------------------------

def reference_forward(x_ids, emb_table, pe_max_len=PE_MAX_LEN):
    pe = make_positional_encoding(pe_max_len, emb_table.shape[1])
    return emb_table[x_ids] + pe[None, :x_ids.shape[1], :]


if __name__ == "__main__":
    B, S = 2, 16
    key = jax.random.PRNGKey(0)
    k_emb, k_ids = jax.random.split(key)

    emb_table = jax.random.normal(k_emb, (VOCAB_SIZE, EMBEDDING_DIM),
                                  jnp.float32) * 0.05
    x_ids = jax.random.randint(k_ids, (B, S), 0, VOCAB_SIZE, dtype=jnp.int32)

    params = prepare_params(emb_table)            # one-time prep (hoisted)
    out = transformer_encoder_forward(x_ids, params)
    jax.block_until_ready(out)

    ref = reference_forward(x_ids, emb_table)
    assert out.shape == (B, S, EMBEDDING_DIM)
    assert jnp.allclose(out, ref, rtol=1e-5, atol=1e-5)

    print("KERNEL_OK")
</pallas_src>

<mosaic_0001>
module attributes {stable_mosaic.version = 11 : i64} {
  func.func @encoder_kernel(%arg0: i32, %arg1: i32, %arg2: memref<32xi32, #tpu.memory_space<smem>>, %arg3: memref<504x128xf32, #tpu.memory_space<vmem>>, %arg4: memref<16x128xf32, #tpu.memory_space<vmem>>, %arg5: memref<1x16x128xf32, #tpu.memory_space<vmem>>) attributes {dimension_semantics = [#tpu.dimension_semantics<parallel>, #tpu.dimension_semantics<parallel>], iteration_bounds = array<i64: 2, 1>, scalar_prefetch = 1 : i64, scratch_operands = 0 : i64, tpu.core_type = #tpu.core_type<tc>, window_params = [{pipeline_mode = #tpu.pipeline_mode<synchronous>, transform_indices = @transform_0, window_bounds = array<i64: 504, 128>}, {transform_indices = @transform_1, window_bounds = array<i64: 16, 128>}, {transform_indices = @transform_2, window_bounds = array<i64: 1, 16, 128>}]} {
    %c16_i32 = arith.constant 16 : i32
    %0 = arith.muli %arg0, %c16_i32 : i32
    %c16_i32_0 = arith.constant 16 : i32
    %1 = arith.muli %arg1, %c16_i32_0 : i32
    %2 = arith.addi %0, %1 : i32
    %c0_i32 = arith.constant 0 : i32
    %3 = arith.addi %2, %c0_i32 : i32
    %4 = arith.index_cast %3 : i32 to index
    %5 = memref.load %arg2[%4] : memref<32xi32, #tpu.memory_space<smem>>
    %6 = arith.index_cast %5 : i32 to index
    %c0 = arith.constant 0 : index
    %7 = vector.load %arg3[%6, %c0] : memref<504x128xf32, #tpu.memory_space<vmem>>, vector<1x128xf32>
    %c1_i32 = arith.constant 1 : i32
    %8 = arith.addi %2, %c1_i32 : i32
    %9 = arith.index_cast %8 : i32 to index
    %10 = memref.load %arg2[%9] : memref<32xi32, #tpu.memory_space<smem>>
    %11 = arith.index_cast %10 : i32 to index
    %c0_1 = arith.constant 0 : index
    %12 = vector.load %arg3[%11, %c0_1] : memref<504x128xf32, #tpu.memory_space<vmem>>, vector<1x128xf32>
    %c2_i32 = arith.constant 2 : i32
    %13 = arith.addi %2, %c2_i32 : i32
    %14 = arith.index_cast %13 : i32 to index
    %15 = memref.load %arg2[%14] : memref<32xi32, #tpu.memory_space<smem>>
    %16 = arith.index_cast %15 : i32 to index
    %c0_2 = arith.constant 0 : index
    %17 = vector.load %arg3[%16, %c0_2] : memref<504x128xf32, #tpu.memory_space<vmem>>, vector<1x128xf32>
    %c3_i32 = arith.constant 3 : i32
    %18 = arith.addi %2, %c3_i32 : i32
    %19 = arith.index_cast %18 : i32 to index
    %20 = memref.load %arg2[%19] : memref<32xi32, #tpu.memory_space<smem>>
    %21 = arith.index_cast %20 : i32 to index
    %c0_3 = arith.constant 0 : index
    %22 = vector.load %arg3[%21, %c0_3] : memref<504x128xf32, #tpu.memory_space<vmem>>, vector<1x128xf32>
    %c4_i32 = arith.constant 4 : i32
    %23 = arith.addi %2, %c4_i32 : i32
    %24 = arith.index_cast %23 : i32 to index
    %25 = memref.load %arg2[%24] : memref<32xi32, #tpu.memory_space<smem>>
    %26 = arith.index_cast %25 : i32 to index
    %c0_4 = arith.constant 0 : index
    %27 = vector.load %arg3[%26, %c0_4] : memref<504x128xf32, #tpu.memory_space<vmem>>, vector<1x128xf32>
    %c5_i32 = arith.constant 5 : i32
    %28 = arith.addi %2, %c5_i32 : i32
    %29 = arith.index_cast %28 : i32 to index
    %30 = memref.load %arg2[%29] : memref<32xi32, #tpu.memory_space<smem>>
    %31 = arith.index_cast %30 : i32 to index
    %c0_5 = arith.constant 0 : index
    %32 = vector.load %arg3[%31, %c0_5] : memref<504x128xf32, #tpu.memory_space<vmem>>, vector<1x128xf32>
    %c6_i32 = arith.constant 6 : i32
    %33 = arith.addi %2, %c6_i32 : i32
    %34 = arith.index_cast %33 : i32 to index
    %35 = memref.load %arg2[%34] : memref<32xi32, #tpu.memory_space<smem>>
    %36 = arith.index_cast %35 : i32 to index
    %c0_6 = arith.constant 0 : index
    %37 = vector.load %arg3[%36, %c0_6] : memref<504x128xf32, #tpu.memory_space<vmem>>, vector<1x128xf32>
    %c7_i32 = arith.constant 7 : i32
    %38 = arith.addi %2, %c7_i32 : i32
    %39 = arith.index_cast %38 : i32 to index
    %40 = memref.load %arg2[%39] : memref<32xi32, #tpu.memory_space<smem>>
    %41 = arith.index_cast %40 : i32 to index
    %c0_7 = arith.constant 0 : index
    %42 = vector.load %arg3[%41, %c0_7] : memref<504x128xf32, #tpu.memory_space<vmem>>, vector<1x128xf32>
    %c8_i32 = arith.constant 8 : i32
    %43 = arith.addi %2, %c8_i32 : i32
    %44 = arith.index_cast %43 : i32 to index
    %45 = memref.load %arg2[%44] : memref<32xi32, #tpu.memory_space<smem>>
    %46 = arith.index_cast %45 : i32 to index
    %c0_8 = arith.constant 0 : index
    %47 = vector.load %arg3[%46, %c0_8] : memref<504x128xf32, #tpu.memory_space<vmem>>, vector<1x128xf32>
    %c9_i32 = arith.constant 9 : i32
    %48 = arith.addi %2, %c9_i32 : i32
    %49 = arith.index_cast %48 : i32 to index
    %50 = memref.load %arg2[%49] : memref<32xi32, #tpu.memory_space<smem>>
    %51 = arith.index_cast %50 : i32 to index
    %c0_9 = arith.constant 0 : index
    %52 = vector.load %arg3[%51, %c0_9] : memref<504x128xf32, #tpu.memory_space<vmem>>, vector<1x128xf32>
    %c10_i32 = arith.constant 10 : i32
    %53 = arith.addi %2, %c10_i32 : i32
    %54 = arith.index_cast %53 : i32 to index
    %55 = memref.load %arg2[%54] : memref<32xi32, #tpu.memory_space<smem>>
    %56 = arith.index_cast %55 : i32 to index
    %c0_10 = arith.constant 0 : index
    %57 = vector.load %arg3[%56, %c0_10] : memref<504x128xf32, #tpu.memory_space<vmem>>, vector<1x128xf32>
    %c11_i32 = arith.constant 11 : i32
    %58 = arith.addi %2, %c11_i32 : i32
    %59 = arith.index_cast %58 : i32 to index
    %60 = memref.load %arg2[%59] : memref<32xi32, #tpu.memory_space<smem>>
    %61 = arith.index_cast %60 : i32 to index
    %c0_11 = arith.constant 0 : index
    %62 = vector.load %arg3[%61, %c0_11] : memref<504x128xf32, #tpu.memory_space<vmem>>, vector<1x128xf32>
    %c12_i32 = arith.constant 12 : i32
    %63 = arith.addi %2, %c12_i32 : i32
    %64 = arith.index_cast %63 : i32 to index
    %65 = memref.load %arg2[%64] : memref<32xi32, #tpu.memory_space<smem>>
    %66 = arith.index_cast %65 : i32 to index
    %c0_12 = arith.constant 0 : index
    %67 = vector.load %arg3[%66, %c0_12] : memref<504x128xf32, #tpu.memory_space<vmem>>, vector<1x128xf32>
    %c13_i32 = arith.constant 13 : i32
    %68 = arith.addi %2, %c13_i32 : i32
    %69 = arith.index_cast %68 : i32 to index
    %70 = memref.load %arg2[%69] : memref<32xi32, #tpu.memory_space<smem>>
    %71 = arith.index_cast %70 : i32 to index
    %c0_13 = arith.constant 0 : index
    %72 = vector.load %arg3[%71, %c0_13] : memref<504x128xf32, #tpu.memory_space<vmem>>, vector<1x128xf32>
    %c14_i32 = arith.constant 14 : i32
    %73 = arith.addi %2, %c14_i32 : i32
    %74 = arith.index_cast %73 : i32 to index
    %75 = memref.load %arg2[%74] : memref<32xi32, #tpu.memory_space<smem>>
    %76 = arith.index_cast %75 : i32 to index
    %c0_14 = arith.constant 0 : index
    %77 = vector.load %arg3[%76, %c0_14] : memref<504x128xf32, #tpu.memory_space<vmem>>, vector<1x128xf32>
    %c15_i32 = arith.constant 15 : i32
    %78 = arith.addi %2, %c15_i32 : i32
    %79 = arith.index_cast %78 : i32 to index
    %80 = memref.load %arg2[%79] : memref<32xi32, #tpu.memory_space<smem>>
    %81 = arith.index_cast %80 : i32 to index
    %c0_15 = arith.constant 0 : index
    %82 = vector.load %arg3[%81, %c0_15] : memref<504x128xf32, #tpu.memory_space<vmem>>, vector<1x128xf32>
    %83 = tpu.concatenate %7, %12, %17, %22, %27, %32, %37, %42, %47, %52, %57, %62, %67, %72, %77, %82 in 0 : vector<1x128xf32>, vector<1x128xf32>, vector<1x128xf32>, vector<1x128xf32>, vector<1x128xf32>, vector<1x128xf32>, vector<1x128xf32>, vector<1x128xf32>, vector<1x128xf32>, vector<1x128xf32>, vector<1x128xf32>, vector<1x128xf32>, vector<1x128xf32>, vector<1x128xf32>, vector<1x128xf32>, vector<1x128xf32> -> vector<16x128xf32>
    %c0_16 = arith.constant 0 : index
    %c0_17 = arith.constant 0 : index
    %84 = vector.load %arg4[%c0_16, %c0_17] : memref<16x128xf32, #tpu.memory_space<vmem>>, vector<16x128xf32>
    %85 = arith.addf %83, %84 : vector<16x128xf32>
    %c0_18 = arith.constant 0 : index
    %c0_19 = arith.constant 0 : index
    %c0_20 = arith.constant 0 : index
    %86 = vector.load %arg5[%c0_18, %c0_19, %c0_20] : memref<1x16x128xf32, #tpu.memory_space<vmem>>, vector<1x16x128xf32>
    %87 = vector.shape_cast %86 : vector<1x16x128xf32> to vector<16x128xf32>
    %88 = vector.shape_cast %85 : vector<16x128xf32> to vector<1x16x128xf32>
    tpu.vector_store %arg5[%c0_18, %c0_19, %c0_20], %88 {strides = array<i32>} : memref<1x16x128xf32, #tpu.memory_space<vmem>>, vector<1x16x128xf32>,
    return
  }
  func.func @transform_0(%arg0: i32, %arg1: i32, %arg2: memref<32xi32, #tpu.memory_space<smem>>) -> (i32, i32) {
    %c0_i32 = arith.constant 0 : i32
    %c0_i32_0 = arith.constant 0 : i32
    %c0_i32_1 = arith.constant 0 : i32
    return %c0_i32, %c0_i32_0 : i32, i32
  }
  func.func @transform_1(%arg0: i32, %arg1: i32, %arg2: memref<32xi32, #tpu.memory_space<smem>>) -> (i32, i32) {
    %c0_i32 = arith.constant 0 : i32
    %c0_i32_0 = arith.constant 0 : i32
    return %arg1, %c0_i32 : i32, i32
  }
  func.func @transform_2(%arg0: i32, %arg1: i32, %arg2: memref<32xi32, #tpu.memory_space<smem>>) -> (i32, i32, i32) {
    %c0_i32 = arith.constant 0 : i32
    %c0_i32_0 = arith.constant 0 : i32
    return %arg0, %arg1, %c0_i32 : i32, i32, i32
  }
}

</mosaic_0001>

<bundles_post_ra>
// kernel: tpu_custom_call.1
= control target key start
LH: loop header
LB: loop body
LE: loop exit
PB: predicated region body
PF: predicated region fallthrough
CT: control target
= control target key end

     0   :  { %s678_s12 = smov [#allocation3]   ;;  %s916_s0 = inlined_call_operand.hbm [shape: s32[32], index: 0, kind: input, shape index: {}]   ;;  %s917_s1 = inlined_call_operand.hbm [shape: f32[504,128], index: 1, kind: input, shape index: {}]   ;;  %s918_s2 = inlined_call_operand.hbm [shape: f32[5120,128], index: 2, kind: input, shape index: {}]   ;;  %s919_s3 = inlined_call_operand.hbm [shape: f32[2,16,128], index: 3, kind: output, shape index: {}]  }
   0x1   :  { %922 = sst [smem:[#allocation14_spill]] %s917_s1 }
   0x2   :  { %9 = dma.hbm_to_smem %s916_s0, 16, %s678_s12, [#allocation2] }
   0x3   :  { %640 = dma.done.wait [#allocation2], 16 }
   0x4   :  { %641 = vsyncadd [#allocation2], 4294967280 }
   0x5   :  { %11 = sfence }
   0x6   :  { %12 = vsyncpa [#allocation5], 0 }
   0x7   :  { %13 = vsyncpa [#allocation8], 0 }
   0x8   :  { %14 = vsyncpa [#allocation6], 0 }
   0x9   :  { %16 = vsyncpa [#allocation6 + $0x1], 0  ;;  %s709_s15 = smov 0   ;;  %s711_s16 = smov 0  }
   0xa   :  { %s713_s17 = smov 0   ;;  %s715_s18 = smov 0  }
   0xb   :  { %s717_s19 = smov 0   ;;  %s719_s20 = smov 0  }
   0xc LB: > { %s433_s0 = sadd.s32 4294967295, %s676_s20   ;;  %s434_s21 = sadd.s32 4294967294, %s676_s20   ;;  %s676_s20 = sphi %s719_s20, %s22_s20   ;;  %s672_s19 = sphi %s717_s19, %s936_s19   ;;  %s668_s18 = sphi %s715_s18, %s935_s18   ;;  %s664_s17 = sphi %s713_s17, %s934_s17   ;;  %s660_s16 = sphi %s711_s16, %s933_s16   ;;  %s656_s15 = sphi %s709_s15, %s932_s15  }
   0xd   : > { %s34_s22 = sadd.s32 1, %s672_s19  ;;  %s90_s23 = sadd.s32 1, %s664_s17 }
   0xe   : > { %p36_p0 = scmp.ge.s32.totalorder %s34_s22, 2  ;;  %p100_p1 = scmp.ne.s32.totalorder %s664_s17, %s660_s16 }
   0xf   : > { %p101_p2 = scmp.eq.s32.totalorder %s433_s0, 1  ;;  %p106_p3 = scmp.ne.s32.totalorder %s660_s16, %s656_s15 }
  0x10   : > { %s938_s22 = smov (%p36_p0, %s34_s22), 0  ;;  %p107_p5 = scmp.eq.s32.totalorder %s434_s21, 1 }
  0x11   : > { %p749_p4 = por %p101_p2, %p100_p1  ;;  %s85_s25 = ssub.s32 %s672_s19, %s938_s22 }
  0x12   : > { %p435_p6 = scmp.ge.s32.totalorder %s676_s20, 1  ;;  %p88_p7 = scmp.eq.s32.totalorder %s85_s25, 0 }
  0x13   : > { %s923_s24 = scalar_select %p749_p4, 1, 0 }
  0x14   : > { %p756_p8 = por %p107_p5, %p106_p3  ;;  %p114_p9 = scmp.lt.s32.totalorder %s676_s20, 3 }
  0x15   : > { %s762_s27 = scalar_select %p88_p7, %s664_s17, %s90_s23  }
  0x16   : > { %s924_s26 = scalar_select %p756_p8, 1, 0 }
  0x17   : > { %p764_p10 = pnand %p435_p6, %p114_p9  ;;  %p768_p11 = scmp.eq.s32.totalorder %s433_s0, 0 }
  0x18   : > { %s679_s30 = smov [#allocation4]   ;;  %s680_s6 = smov [#allocation7]  }
  0x19   : > { %p459_p12 = pneg %p764_p10  ;;  %s126_s4 = sshll.u32 %s679_s30, 4  ;;  %s127_s4 = int_to_ptr.vmem [resolvable:$true] %s126_s4 }
  0x1a   : > { %s142_s7 = sshll.u32 %s680_s6, 4  ;;  %s549_s8 = scalar_lea.vmem %s127_s4, 8064  ;;  %s143_s7 = int_to_ptr.vmem [resolvable:$true] %s142_s7 }
  0x1b   : > { %p776_p13 = pnand %p768_p11, %p459_p12  ;;  %p550_p1 = scmp.ne.s32.totalorder %s127_s4, %s549_s8 }
  0x1c   : > { %p557_p5 = scmp.lt.s32.totalorder %s127_s4, %s127_s4  ;;  %p558_p6 = scmp.lt.s32.totalorder %s549_s8, %s549_s8 }
  0x1d   : > { %p540_p0 = pneg %p776_p13 }
  0x1e   : > { %p559_p7 = por %p558_p6, %p557_p5 }
  0x1f   : > { %p552_p2 = pnand %p550_p1, %p540_p0 }
  0x21   : > { %p553_p3 = pneg %p552_p2 }
  0x23   : > { %p560_p9 = pnand %p559_p7, %p553_p3 }
  0x25   : > { %563 = shalt.err (!%p560_p9)
}
  0x26   : > { %s681_s9 = smov 128   ;;  %s682_s10 = smov 8  }
  0x27   : > { %s928_s1 = sld [smem:[#allocation14_spill]]  ;;  %s575_s13 = scalar_lea.vmem %s143_s7, 256 }
  0x28   : > { %p576_p12 = scmp.ne.s32.totalorder %s143_s7, %s575_s13  ;;  %p583_p8 = scmp.lt.s32.totalorder %s143_s7, %s143_s7 }
  0x29   : > { %p584_p4 = scmp.lt.s32.totalorder %s575_s13, %s575_s13 }
  0x2a   : > { %p578_p1 = pnand %p576_p12, %p540_p0 }
  0x2b   : > { %p585_p5 = por %p584_p4, %p583_p8 }
  0x2c   : > { %p579_p2 = pneg %p578_p1 }
  0x2d   : > { %462 = dma.hbm_to_vmem [thread:$0]  (!%p776_p13), %s928_s1, 8064, %s127_s4, [#allocation5], %s681_s9, %s681_s9, %s682_s10  }
  0x2e   : > { %p586_p3 = pnand %p585_p5, %p579_p2 }
  0x30   : > { %589 = shalt.err (!%p586_p3)
}
  0x31   : > { %465 = dma.hbm_to_vmem [thread:$0]  (!%p776_p13), %s918_s2, 256, %s143_s7, [#allocation8], %s681_s9, %s681_s9, %s682_s10  }
  0x32   : > { %158 = sbr.rel (%p764_p10) target bundleno = 109 (0x6d), region = 28 }
  0x37   : > { %643 = dma.done.wait (%p768_p11), [#allocation5], 8064  }
  0x38   : > { %645 = vsyncadd (%p768_p11), [#allocation5], 4294959232 }
  0x39   : > { %647 = dma.done.wait (%p768_p11), [#allocation8], 256  }
  0x3a   : > { %649 = vsyncadd (%p768_p11), [#allocation8], 4294967040  ;;  %s921_s21 = sand.u32 1, %s660_s16   ;;  %s810_s23 = sshll.u32 %s668_s18, 4  ;;  %vm289_vm0 = vcmask 1040384   ;;  %vm291_vm1 = vcmask 1041408  }
  0x3b   : > { %s184_s25 = sld [smem:[#allocation3 + %s810_s23]]  ;;  %s815_s28 = sshll.u32 %s921_s21, 4  ;;  %vm293_vm2 = vcmask 1042432   ;;  %vm295_vm3 = vcmask 1043456   ;;  %vm297_vm4 = vcmask 1044480   ;;  %vm299_vm5 = vcmask 1045504  }
  0x3c   : > { %s187_s29 = sadd.s32 1, %s810_s23  ;;  %s191_s4 = sadd.s32 2, %s810_s23  ;;  %vm301_vm6 = vcmask 1046528   ;;  %v310_v20 = vld [vmem:[#allocation7] sm:$0xff]  ;;  %v311_v45 = vld [vmem:[#allocation7 + $0x8] sm:$0xff] }
  0x3d   : > { %s188_s30 = sld [smem:[#allocation3 + %s187_s29]]  ;;  %s195_s6 = sadd.s32 3, %s810_s23 }
  0x3e   : > { %s192_s5 = sld [smem:[#allocation3 + %s191_s4]]  ;;  %s199_s8 = sadd.s32 4, %s810_s23 }
  0x3f   : > { %s196_s7 = sld [smem:[#allocation3 + %s195_s6]]  ;;  %s203_s10 = sadd.s32 5, %s810_s23 }
  0x40   : > { %s200_s9 = sld [smem:[#allocation3 + %s199_s8]]  ;;  %s207_s12 = sadd.s32 6, %s810_s23 }
  0x41   : > { %s204_s11 = sld [smem:[#allocation3 + %s203_s10]]  ;;  %s211_s13 = sadd.s32 7, %s810_s23 }
  0x42   : > { %s824_s14 = sld [smem:[#allocation3 + %s207_s12]]  ;;  %s185_s0 = scalar_lea.vmem [#allocation4], %s184_s25 }
  0x43   : > { %v186_v0 = vld [vmem:[%s185_s0] sm:$0x1]  ;;  %s189_s1 = scalar_lea.vmem [#allocation4], %s188_s30  ;;  %s826_s21 = sld [smem:[#allocation3 + %s211_s13]] }
  0x44   : > { %v190_v1 = vld [vmem:[%s189_s1] sm:$0x1]  ;;  %s193_s29 = scalar_lea.vmem [#allocation4], %s192_s5  ;;  %s215_s25 = sadd.s32 8, %s810_s23 }
  0x45   : > { %v194_v2 = vld [vmem:[%s193_s29] sm:$0x1]  ;;  %v248_v3 = vrot.slane %v190_v1, 7  ;;  %s197_s4 = scalar_lea.vmem [#allocation4], %s196_s7  ;;  %s219_s30 = sadd.s32 9, %s810_s23 }
  0x46   : > { %v198_v4 = vld [vmem:[%s197_s4] sm:$0x1]  ;;  %v251_v5 = vrot.slane %v194_v2, 6  ;;  %s201_s6 = scalar_lea.vmem [#allocation4], %s200_s9  ;;  %s833_s5 = sld [smem:[#allocation3 + %s215_s25]] }
  0x47   : > { %v202_v6 = vld [vmem:[%s201_s6] sm:$0x1]  ;;  %v254_v7 = vrot.slane %v198_v4, 5  ;;  %v290_v8 = vsel %vm289_vm0, %v186_v0, %v248_v3  ;;  %s205_s1 = scalar_lea.vmem [#allocation4], %s204_s11  ;;  %s220_s8 = sld [smem:[#allocation3 + %s219_s30]] }
  0x48   : > { %v206_v9 = vld [vmem:[%s205_s1] sm:$0x1]  ;;  %v257_v10 = vrot.slane %v202_v6, 4  ;;  %v292_v11 = vsel %vm291_vm1, %v290_v8, %v251_v5  ;;  %s209_s7 = scalar_lea.vmem [#allocation4], %s824_s14  ;;  %s223_s10 = sadd.s32 10, %s810_s23 }
  0x49   : > { %v260_v12 = vrot.slane %v206_v9, 3  ;;  %v294_v13 = vsel %vm293_vm2, %v292_v11, %v254_v7  ;;  %v210_v14 = vld [vmem:[%s209_s7] sm:$0x1]  ;;  %s213_s9 = scalar_lea.vmem [#allocation4], %s826_s21  ;;  %s227_s11 = sadd.s32 11, %s810_s23 }
  0x4a   : > { %v296_v15 = vsel %vm295_vm3, %v294_v13, %v257_v10  ;;  %v214_v16 = vld [vmem:[%s213_s9] sm:$0x1]  ;;  %v263_v17 = vrot.slane %v210_v14, 2  ;;  %s224_s12 = sld [smem:[#allocation3 + %s223_s10]]  ;;  %s231_s13 = sadd.s32 12, %s810_s23 }
  0x4b   : > { %v298_v18 = vsel %vm297_vm4, %v296_v15, %v260_v12  ;;  %v266_v19 = vrot.slane %v214_v16, 1  ;;  %s228_s14 = sld [smem:[#allocation3 + %s227_s11]]  ;;  %s235_s0 = sadd.s32 13, %s810_s23 }
  0x4c   : > { %v300_v21 = vsel %vm299_vm5, %v298_v18, %v263_v17  ;;  %s232_s21 = sld [smem:[#allocation3 + %s231_s13]]  ;;  %s239_s29 = sadd.s32 14, %s810_s23 }
  0x4d   : > { %v302_v22 = vsel %vm301_vm6, %v300_v21, %v266_v19  ;;  %s236_s4 = sld [smem:[#allocation3 + %s235_s0]]  ;;  %s847_s1 = scalar_lea.vmem [#allocation9], %s815_s28 }
  0x4e   : > { %v312_v23 = vadd.f32 %v310_v20, %v302_v22  ;;  %s240_s6 = sld [smem:[#allocation3 + %s239_s29]]  ;;  %s217_s25 = scalar_lea.vmem [#allocation4], %s833_s5 }
  0x4f   : > { %v218_v24 = vld [vmem:[%s217_s25] sm:$0x1]  ;;  %s221_s30 = scalar_lea.vmem [#allocation4], %s220_s8  ;;  %s243_s7 = sadd.s32 15, %s810_s23 }
  0x50   : > { %314 = vst [vmem:[%s847_s1] sm:$0xff] %v312_v23  ;;  %v222_v25 = vld [vmem:[%s221_s30] sm:$0x1]  ;;  %s244_s9 = sld [smem:[#allocation3 + %s243_s7]]  ;;  %s225_s10 = scalar_lea.vmem [#allocation4], %s224_s12 }
  0x51   : > { %v269_v26 = vrot.slane %v222_v25, 7  ;;  %v226_v27 = vld [vmem:[%s225_s10] sm:$0x1]  ;;  %s229_s11 = scalar_lea.vmem [#allocation4], %s228_s14  ;;  %s332_s5 = sshll.u32 %s847_s1, 4  ;;  %s860_s5 = int_to_ptr.vmem [resolvable:$true] %s332_s5 }
  0x52   : > { %v230_v28 = vld [vmem:[%s229_s11] sm:$0x1]  ;;  %v272_v29 = vrot.slane %v226_v27, 6  ;;  %s233_s13 = scalar_lea.vmem [#allocation4], %s232_s21  ;;  %s448_s12 = sshll.u32 %s668_s18, 8 }
  0x53   : > { %v303_v30 = vsel %vm289_vm0, %v218_v24, %v269_v26  ;;  %v234_v31 = vld [vmem:[%s233_s13] sm:$0x1]  ;;  %v275_v32 = vrot.slane %v230_v28, 5  ;;  %s237_s28 = scalar_lea.vmem [#allocation4], %s236_s4  ;;  %s866_s21 = scalar_lea.hbm %s919_s3, %s448_s12 }
  0x54   : > { %v238_v33 = vld [vmem:[%s237_s28] sm:$0x1]  ;;  %v278_v34 = vrot.slane %v234_v31, 4  ;;  %v304_v35 = vsel %vm291_vm1, %v303_v30, %v272_v29  ;;  %s241_s23 = scalar_lea.vmem [#allocation4], %s240_s6  ;;  %s929_s29 = sand.u32 1, %s660_s16  }
  0x55   : > { %v242_v36 = vld [vmem:[%s241_s23] sm:$0x1]  ;;  %v281_v37 = vrot.slane %v238_v33, 3  ;;  %v305_v38 = vsel %vm293_vm2, %v304_v35, %v275_v32  ;;  %s871_s18 = scalar_lea.sflag [#allocation6], %s929_s29  ;;  %s590_s4 = scalar_lea.vmem %s860_s5, 256 }
  0x56   : > { %v284_v39 = vrot.slane %v242_v36, 2  ;;  %v306_v40 = vsel %vm295_vm3, %v305_v38, %v278_v34  ;;  %s245_s8 = scalar_lea.vmem [#allocation4], %s244_s9  ;;  %p591_p4 = scmp.ne.s32.totalorder %s860_s5, %s590_s4 }
  0x57   : > { %v246_v41 = vld [vmem:[%s245_s8] sm:$0x1]  ;;  %v307_v42 = vsel %vm297_vm4, %v306_v40, %v281_v37  ;;  %p930_p8 = scmp.ne.s32.totalorder %s923_s24, 0  ;;  %s683_s6 = smov [#allocation9]  }
  0x58   : > { %v287_v43 = vrot.slane %v246_v41, 1  ;;  %v308_v44 = vsel %vm299_vm5, %v307_v42, %v284_v39  ;;  %s594_s25 = sshll.u32 %s683_s6, 4  ;;  %s595_s25 = int_to_ptr.vmem [resolvable:$false] %s594_s25 }
  0x59   : > { %p592_p10 = pnand %p591_p4, %p930_p8  ;;  %s596_s30 = scalar_lea.vmem %s595_s25, 512 }
  0x5a   : > { %v309_v46 = vsel %vm301_vm6, %v308_v44, %v287_v43  ;;  %p597_p13 = scmp.lt.s32.totalorder %s860_s5, %s595_s25  ;;  %p598_p0 = scmp.lt.s32.totalorder %s596_s30, %s590_s4 }
  0x5b   : > { %v313_v47 = vadd.f32 %v311_v45, %v309_v46  ;;  %p593_p11 = pneg %p592_p10 }
  0x5c   : > { %p599_p6 = por %p598_p0, %p597_p13 }
  0x5d   : > { %315 = vst [vmem:[%s847_s1 + $0x8] sm:$0xff] %v313_v47 }
  0x5e   : > { %p600_p7 = pnand %p599_p6, %p593_p11 }
  0x60   : > { %603 = shalt.err (!%p600_p7)
}
  0x61   : > { %s604_s1 = scalar_lea.hbm %s866_s21, 256  ;;  %s608_s10 = scalar_lea.hbm %s919_s3, 512 }
  0x62   : > { %p605_p9 = scmp.ne.s32.totalorder %s866_s21, %s604_s1  ;;  %p609_p2 = scmp.lt.s32.totalorder %s866_s21, %s919_s3 }
  0x63   : > { %p610_p5 = scmp.lt.s32.totalorder %s608_s10, %s604_s1 }
  0x64   : > { %p606_p12 = pnand %p605_p9, %p930_p8 }
  0x65   : > { %p611_p3 = por %p610_p5, %p609_p2 }
  0x66   : > { %p607_p1 = pneg %p606_p12 }
  0x68   : > { %p612_p4 = pnand %p611_p3, %p607_p1 }
  0x6a   : > { %615 = shalt.err (!%p612_p4)
}
  0x6b   : > { %s684_s28 = smov 128   ;;  %s685_s23 = smov 8  }
  0x6c   : > { %457 = dma.vmem_to_hbm [thread:$0]  (%p930_p8), %s860_s5, 256, %s866_s21, %s871_s18, %s684_s28, %s684_s28, %s685_s23  }
  0x6d PF: > { %p474_p10 = scmp.ge.s32.totalorder %s676_s20, 2  ;;  %s347_s8 = sand.u32 1, %s656_s15  }
  0x6e   : > { %p931_p11 = scmp.ne.s32.totalorder %s924_s26, 0  ;;  %s348_s12 = scalar_lea.sflag [#allocation6], %s347_s8 }
  0x70   : > { %p467_p13 = pnand %p474_p10, %p931_p11 }
  0x72   : > { %p468_p0 = pneg %p467_p13 }
  0x74   : > { %651 = dma.done.wait (%p468_p0), %s348_s12, 256  }
  0x75   : > { %653 = vsyncadd (%p468_p0), %s348_s12, 4294967040  ;;  %s22_s20 = sadd.s32 1, %s676_s20   ;;  %s932_s15 = smov %s660_s16 }
  0x76   : > { %p19_p6 = scmp.ge.s32.totalorder %s22_s20, 4   ;;  %s933_s16 = smov %s664_s17 }
  0x77   : > { %s934_s17 = smov %s762_s27  ;;  %s935_s18 = smov %s672_s19 }
  0x78   : > { %s936_s19 = smov %s938_s22  ;;  %21 = sbr.rel (!%p19_p6) target bundleno = 12 (0xc), region = 86 }
  0x7d   :  { %353 = vsyncpa [#allocation5], 1 }
  0x7e   :  { %355 = vsyncpa [#allocation5 + $0x1], 1 }
  0x7f   :  { %356 = vsyncpa [#allocation8], 1 }
  0x80   :  { %357 = vsyncpa [#allocation6], 1 }
  0x81   :  { %359 = vsyncpa [#allocation6 + $0x1], 1 }

</bundles_post_ra>
